<compile_context>
chip_gen: v5e
topology: v5e:2x2
jax: 0.10.0
libtpu: 0.0.40
codegen_flags: <defaults>
</compile_context>

<pallas_src>
import jax
import jax.numpy as jnp
from jax.experimental import pallas as pl
from jax.experimental.pallas import tpu as pltpu


def _make_mlp_kernel(num_linear):
    """Fused MLP kernel: `num_linear` Linear layers, ReLU between all but last.

    Ref order: x (bf16), w0..w{N-1} (bf16), b0..b{N-1} (f32), out (f32).
    """
    def kernel(*refs):
        x_ref = refs[0]
        w_refs = refs[1:1 + num_linear]
        b_refs = refs[1 + num_linear:1 + 2 * num_linear]
        o_ref = refs[-1]

        h = x_ref[...]                                  # bf16 into the MXU
        for i in range(num_linear):
            # bf16 x bf16 matmul with f32 accumulation (MXU-native path).
            acc = jnp.dot(h, w_refs[i][...],
                          preferred_element_type=jnp.float32)
            acc = acc + b_refs[i][...]                  # bias in f32
            if i < num_linear - 1:
                acc = jnp.maximum(acc, 0.0)             # ReLU in f32
                h = acc.astype(jnp.bfloat16)            # back to bf16 for next MXU pass
            else:
                h = acc
        o_ref[...] = h.astype(o_ref.dtype)

    return kernel


def simple_fc_forward(x_nchw, params, *, tm_max=256):
    """params: list of (W, b) with W: (in, out) f32, b: (1, out) f32."""
    B = x_nchw.shape[0]
    x2d = x_nchw.reshape(B, -1)                 # torch: x.view(x.size(0), -1)
    K = x2d.shape[1]
    out_dim = params[-1][0].shape[1]
    num_linear = len(params)

    # Batch tiling: one full-batch tile when B is small; 256-row tiles otherwise
    # (block equal to full array dim is always layout-legal).
    if B <= tm_max:
        tm, b_pad = B, B
    else:
        tm = tm_max
        b_pad = ((B + tm - 1) // tm) * tm
    if b_pad != B:
        x2d = jnp.pad(x2d, ((0, b_pad - B), (0, 0)))

    # Lane-dense output: pad the final layer's output features to a multiple of
    # 128 so the HBM store is an unmasked vst; slice back in the wrapper.
    out_pad = ((out_dim + 127) // 128) * 128

    x_bf16 = x2d.astype(jnp.bfloat16)
    w_list, b_list = [], []
    for li, (w, bias) in enumerate(params):
        if li == num_linear - 1 and out_pad != out_dim:
            w = jnp.pad(w, ((0, 0), (0, out_pad - out_dim)))
            bias = jnp.pad(bias, ((0, 0), (0, out_pad - out_dim)))
        w_list.append(w.astype(jnp.bfloat16))       # MXU is bf16-native
        b_list.append(bias.astype(jnp.float32))     # bias add stays f32

    grid = (b_pad // tm,)

    # x / out tiled over batch; weights & biases pinned via constant index_map
    # so they are fetched once and stay VMEM-resident across grid steps.
    x_spec = pl.BlockSpec((tm, K), lambda i: (i, 0))
    w_specs = [pl.BlockSpec(w.shape, lambda i: (0, 0)) for w in w_list]
    b_specs = [pl.BlockSpec(b.shape, lambda i: (0, 0)) for b in b_list]
    out_spec = pl.BlockSpec((tm, out_pad), lambda i: (i, 0))

    out_padded = pl.pallas_call(
        _make_mlp_kernel(num_linear),
        out_shape=jax.ShapeDtypeStruct((b_pad, out_pad), jnp.float32),
        grid=grid,
        in_specs=[x_spec] + w_specs + b_specs,
        out_specs=out_spec,
        compiler_params=pltpu.CompilerParams(
            # v7x: shard batch tiles across both TensorCores; no-op on v5e/v6e.
            dimension_semantics=("parallel",),
            # Explicit scoped-VMEM budget (v5e default is only 16 MiB).
            vmem_limit_bytes=32 * 1024 * 1024,
        ),
    )(x_bf16, *w_list, *b_list)

    return out_padded[:B, :out_dim]


def init_params(key, input_size, hidden_size, output_size,
                num_layers=3, down_s_factor=1):
    """Deterministic synthetic init. Layer sizes mirror the PyTorch module."""
    dims = [input_size, hidden_size]
    for nl in range(1, num_layers + 1):
        dims.append(hidden_size // 2 ** (nl * down_s_factor))
    dims.append(output_size)

    params = []
    for i in range(len(dims) - 1):
        key, kw, kb = jax.random.split(key, 3)
        fan_in = dims[i]
        scale = 1.0 / jnp.sqrt(jnp.float32(fan_in))
        w = jax.random.uniform(kw, (dims[i], dims[i + 1]),
                               minval=-scale, maxval=scale, dtype=jnp.float32)
        bias = jax.random.uniform(kb, (1, dims[i + 1]),
                                  minval=-scale, maxval=scale, dtype=jnp.float32)
        params.append((w, bias))
    return params


def reference_forward(x_nchw, params, matmul_dtype=jnp.float32):
    """Pure-JAX reference. matmul_dtype=bf16 mirrors the kernel's precision."""
    h = x_nchw.reshape(x_nchw.shape[0], -1).astype(matmul_dtype)
    for i, (w, bias) in enumerate(params):
        h = jnp.dot(h, w.astype(matmul_dtype),
                    preferred_element_type=jnp.float32) + bias
        if i < len(params) - 1:
            h = jnp.maximum(h, 0.0).astype(matmul_dtype)
    return h.astype(jnp.float32)


if __name__ == "__main__":
    key = jax.random.PRNGKey(0)
    kx, kp = jax.random.split(key)

    # x: (batch=2, channels=4, H=16, W=16) -> flattened input_size = 1024
    B, C, H, W = 2, 4, 16, 16
    input_size = C * H * W
    hidden_size = 128
    output_size = 8

    x = jax.random.normal(kx, (B, C, H, W), dtype=jnp.float32)
    params = init_params(kp, input_size, hidden_size, output_size)

    out = jax.block_until_ready(simple_fc_forward(x, params))
    assert out.shape == (B, output_size), out.shape

    # Strict-ish check vs a reference that mirrors kernel precision
    # (bf16 matmul inputs, f32 accumulation).
    ref_bf16 = reference_forward(x, params, matmul_dtype=jnp.bfloat16)
    assert jnp.allclose(out, ref_bf16, atol=1e-3, rtol=1e-3), \
        "mismatch vs bf16-precision reference"

    # Loose check vs the pure-f32 forward (PyTorch-equivalent semantics).
    ref_f32 = reference_forward(x, params, matmul_dtype=jnp.float32)
    assert jnp.allclose(out, ref_f32, atol=5e-2, rtol=5e-2), \
        "mismatch vs f32 reference"

    print("KERNEL_OK")
</pallas_src>

<mosaic_0001>
module attributes {stable_mosaic.version = 11 : i64} {
  func.func @kernel(%arg0: i32, %arg1: memref<2x1024xbf16, #tpu.memory_space<vmem>>, %arg2: memref<1024x128xbf16, #tpu.memory_space<vmem>>, %arg3: memref<128x64xbf16, #tpu.memory_space<vmem>>, %arg4: memref<64x32xbf16, #tpu.memory_space<vmem>>, %arg5: memref<32x16xbf16, #tpu.memory_space<vmem>>, %arg6: memref<16x128xbf16, #tpu.memory_space<vmem>>, %arg7: memref<1x128xf32, #tpu.memory_space<vmem>>, %arg8: memref<1x64xf32, #tpu.memory_space<vmem>>, %arg9: memref<1x32xf32, #tpu.memory_space<vmem>>, %arg10: memref<1x16xf32, #tpu.memory_space<vmem>>, %arg11: memref<1x128xf32, #tpu.memory_space<vmem>>, %arg12: memref<2x128xf32, #tpu.memory_space<vmem>>) attributes {dimension_semantics = [#tpu.dimension_semantics<parallel>], iteration_bounds = array<i64: 1>, scalar_prefetch = 0 : i64, scratch_operands = 0 : i64, tpu.core_type = #tpu.core_type<tc>, window_params = [{transform_indices = @transform_0, window_bounds = array<i64: 2, 1024>}, {pipeline_mode = #tpu.pipeline_mode<synchronous>, transform_indices = @transform_1, window_bounds = array<i64: 1024, 128>}, {pipeline_mode = #tpu.pipeline_mode<synchronous>, transform_indices = @transform_2, window_bounds = array<i64: 128, 64>}, {pipeline_mode = #tpu.pipeline_mode<synchronous>, transform_indices = @transform_3, window_bounds = array<i64: 64, 32>}, {pipeline_mode = #tpu.pipeline_mode<synchronous>, transform_indices = @transform_4, window_bounds = array<i64: 32, 16>}, {pipeline_mode = #tpu.pipeline_mode<synchronous>, transform_indices = @transform_5, window_bounds = array<i64: 16, 128>}, {pipeline_mode = #tpu.pipeline_mode<synchronous>, transform_indices = @transform_6, window_bounds = array<i64: 1, 128>}, {pipeline_mode = #tpu.pipeline_mode<synchronous>, transform_indices = @transform_7, window_bounds = array<i64: 1, 64>}, {pipeline_mode = #tpu.pipeline_mode<synchronous>, transform_indices = @transform_8, window_bounds = array<i64: 1, 32>}, {pipeline_mode = #tpu.pipeline_mode<synchronous>, transform_indices = @transform_9, window_bounds = array<i64: 1, 16>}, {pipeline_mode = #tpu.pipeline_mode<synchronous>, transform_indices = @transform_10, window_bounds = array<i64: 1, 128>}, {transform_indices = @transform_11, window_bounds = array<i64: 2, 128>}]} {
    %c0 = arith.constant 0 : index
    %c0_0 = arith.constant 0 : index
    %0 = vector.load %arg1[%c0, %c0_0] : memref<2x1024xbf16, #tpu.memory_space<vmem>>, vector<2x1024xbf16>
    %c0_1 = arith.constant 0 : index
    %c0_2 = arith.constant 0 : index
    %1 = vector.load %arg2[%c0_1, %c0_2] : memref<1024x128xbf16, #tpu.memory_space<vmem>>, vector<1024x128xbf16>
    %cst = arith.constant dense<0.000000e+00> : vector<2x128xf32>
    %2 = tpu.matmul %0, %1, %cst {dimension_numbers = #tpu.dot_dimension_numbers<[1], [0], [0], [1], [0, 0, 1, 1], [], []>} : vector<2x1024xbf16>, vector<1024x128xbf16>, vector<2x128xf32> -> vector<2x128xf32>
    %c0_3 = arith.constant 0 : index
    %c0_4 = arith.constant 0 : index
    %3 = vector.load %arg7[%c0_3, %c0_4] : memref<1x128xf32, #tpu.memory_space<vmem>>, vector<1x128xf32>
    %4 = vector.broadcast %3 : vector<1x128xf32> to vector<2x128xf32>
    %5 = arith.addf %2, %4 : vector<2x128xf32>
    %cst_5 = arith.constant 0.000000e+00 : f32
    %6 = vector.broadcast %cst_5 : f32 to vector<2x128xf32>
    %7 = arith.maximumf %5, %6 : vector<2x128xf32>
    %8 = arith.truncf %7 : vector<2x128xf32> to vector<2x128xbf16>
    %c0_6 = arith.constant 0 : index
    %c0_7 = arith.constant 0 : index
    %9 = vector.load %arg3[%c0_6, %c0_7] : memref<128x64xbf16, #tpu.memory_space<vmem>>, vector<128x64xbf16>
    %cst_8 = arith.constant dense<0.000000e+00> : vector<2x64xf32>
    %10 = tpu.matmul %8, %9, %cst_8 {dimension_numbers = #tpu.dot_dimension_numbers<[1], [0], [0], [1], [0, 0, 1, 1], [], []>} : vector<2x128xbf16>, vector<128x64xbf16>, vector<2x64xf32> -> vector<2x64xf32>
    %c0_9 = arith.constant 0 : index
    %c0_10 = arith.constant 0 : index
    %11 = vector.load %arg8[%c0_9, %c0_10] : memref<1x64xf32, #tpu.memory_space<vmem>>, vector<1x64xf32>
    %12 = vector.broadcast %11 : vector<1x64xf32> to vector<2x64xf32>
    %13 = arith.addf %10, %12 : vector<2x64xf32>
    %cst_11 = arith.constant 0.000000e+00 : f32
    %14 = vector.broadcast %cst_11 : f32 to vector<2x64xf32>
    %15 = arith.maximumf %13, %14 : vector<2x64xf32>
    %16 = arith.truncf %15 : vector<2x64xf32> to vector<2x64xbf16>
    %c0_12 = arith.constant 0 : index
    %c0_13 = arith.constant 0 : index
    %17 = vector.load %arg4[%c0_12, %c0_13] : memref<64x32xbf16, #tpu.memory_space<vmem>>, vector<64x32xbf16>
    %cst_14 = arith.constant dense<0.000000e+00> : vector<2x32xf32>
    %18 = tpu.matmul %16, %17, %cst_14 {dimension_numbers = #tpu.dot_dimension_numbers<[1], [0], [0], [1], [0, 0, 1, 1], [], []>} : vector<2x64xbf16>, vector<64x32xbf16>, vector<2x32xf32> -> vector<2x32xf32>
    %c0_15 = arith.constant 0 : index
    %c0_16 = arith.constant 0 : index
    %19 = vector.load %arg9[%c0_15, %c0_16] : memref<1x32xf32, #tpu.memory_space<vmem>>, vector<1x32xf32>
    %20 = vector.broadcast %19 : vector<1x32xf32> to vector<2x32xf32>
    %21 = arith.addf %18, %20 : vector<2x32xf32>
    %cst_17 = arith.constant 0.000000e+00 : f32
    %22 = vector.broadcast %cst_17 : f32 to vector<2x32xf32>
    %23 = arith.maximumf %21, %22 : vector<2x32xf32>
    %24 = arith.truncf %23 : vector<2x32xf32> to vector<2x32xbf16>
    %c0_18 = arith.constant 0 : index
    %c0_19 = arith.constant 0 : index
    %25 = vector.load %arg5[%c0_18, %c0_19] : memref<32x16xbf16, #tpu.memory_space<vmem>>, vector<32x16xbf16>
    %cst_20 = arith.constant dense<0.000000e+00> : vector<2x16xf32>
    %26 = tpu.matmul %24, %25, %cst_20 {dimension_numbers = #tpu.dot_dimension_numbers<[1], [0], [0], [1], [0, 0, 1, 1], [], []>} : vector<2x32xbf16>, vector<32x16xbf16>, vector<2x16xf32> -> vector<2x16xf32>
    %c0_21 = arith.constant 0 : index
    %c0_22 = arith.constant 0 : index
    %27 = vector.load %arg10[%c0_21, %c0_22] : memref<1x16xf32, #tpu.memory_space<vmem>>, vector<1x16xf32>
    %28 = vector.broadcast %27 : vector<1x16xf32> to vector<2x16xf32>
    %29 = arith.addf %26, %28 : vector<2x16xf32>
    %cst_23 = arith.constant 0.000000e+00 : f32
    %30 = vector.broadcast %cst_23 : f32 to vector<2x16xf32>
    %31 = arith.maximumf %29, %30 : vector<2x16xf32>
    %32 = arith.truncf %31 : vector<2x16xf32> to vector<2x16xbf16>
    %c0_24 = arith.constant 0 : index
    %c0_25 = arith.constant 0 : index
    %33 = vector.load %arg6[%c0_24, %c0_25] : memref<16x128xbf16, #tpu.memory_space<vmem>>, vector<16x128xbf16>
    %cst_26 = arith.constant dense<0.000000e+00> : vector<2x128xf32>
    %34 = tpu.matmul %32, %33, %cst_26 {dimension_numbers = #tpu.dot_dimension_numbers<[1], [0], [0], [1], [0, 0, 1, 1], [], []>} : vector<2x16xbf16>, vector<16x128xbf16>, vector<2x128xf32> -> vector<2x128xf32>
    %c0_27 = arith.constant 0 : index
    %c0_28 = arith.constant 0 : index
    %35 = vector.load %arg11[%c0_27, %c0_28] : memref<1x128xf32, #tpu.memory_space<vmem>>, vector<1x128xf32>
    %36 = vector.broadcast %35 : vector<1x128xf32> to vector<2x128xf32>
    %37 = arith.addf %34, %36 : vector<2x128xf32>
    %c0_29 = arith.constant 0 : index
    %c0_30 = arith.constant 0 : index
    %38 = vector.load %arg12[%c0_29, %c0_30] : memref<2x128xf32, #tpu.memory_space<vmem>>, vector<2x128xf32>
    tpu.vector_store %arg12[%c0_29, %c0_30], %37 {strides = array<i32>} : memref<2x128xf32, #tpu.memory_space<vmem>>, vector<2x128xf32>,
    return
  }
  func.func @transform_0(%arg0: i32) -> (i32, i32) {
    %c0_i32 = arith.constant 0 : i32
    %c0_i32_0 = arith.constant 0 : i32
    return %arg0, %c0_i32 : i32, i32
  }
  func.func @transform_1(%arg0: i32) -> (i32, i32) {
    %c0_i32 = arith.constant 0 : i32
    %c0_i32_0 = arith.constant 0 : i32
    %c0_i32_1 = arith.constant 0 : i32
    return %c0_i32, %c0_i32_0 : i32, i32
  }
  func.func @transform_2(%arg0: i32) -> (i32, i32) {
    %c0_i32 = arith.constant 0 : i32
    %c0_i32_0 = arith.constant 0 : i32
    %c0_i32_1 = arith.constant 0 : i32
    return %c0_i32, %c0_i32_0 : i32, i32
  }
  func.func @transform_3(%arg0: i32) -> (i32, i32) {
    %c0_i32 = arith.constant 0 : i32
    %c0_i32_0 = arith.constant 0 : i32
    %c0_i32_1 = arith.constant 0 : i32
    return %c0_i32, %c0_i32_0 : i32, i32
  }
  func.func @transform_4(%arg0: i32) -> (i32, i32) {
    %c0_i32 = arith.constant 0 : i32
    %c0_i32_0 = arith.constant 0 : i32
    %c0_i32_1 = arith.constant 0 : i32
    return %c0_i32, %c0_i32_0 : i32, i32
  }
  func.func @transform_5(%arg0: i32) -> (i32, i32) {
    %c0_i32 = arith.constant 0 : i32
    %c0_i32_0 = arith.constant 0 : i32
    %c0_i32_1 = arith.constant 0 : i32
    return %c0_i32, %c0_i32_0 : i32, i32
  }
  func.func @transform_6(%arg0: i32) -> (i32, i32) {
    %c0_i32 = arith.constant 0 : i32
    %c0_i32_0 = arith.constant 0 : i32
    %c0_i32_1 = arith.constant 0 : i32
    return %c0_i32, %c0_i32_0 : i32, i32
  }
  func.func @transform_7(%arg0: i32) -> (i32, i32) {
    %c0_i32 = arith.constant 0 : i32
    %c0_i32_0 = arith.constant 0 : i32
    %c0_i32_1 = arith.constant 0 : i32
    return %c0_i32, %c0_i32_0 : i32, i32
  }
  func.func @transform_8(%arg0: i32) -> (i32, i32) {
    %c0_i32 = arith.constant 0 : i32
    %c0_i32_0 = arith.constant 0 : i32
    %c0_i32_1 = arith.constant 0 : i32
    return %c0_i32, %c0_i32_0 : i32, i32
  }
  func.func @transform_9(%arg0: i32) -> (i32, i32) {
    %c0_i32 = arith.constant 0 : i32
    %c0_i32_0 = arith.constant 0 : i32
    %c0_i32_1 = arith.constant 0 : i32
    return %c0_i32, %c0_i32_0 : i32, i32
  }
  func.func @transform_10(%arg0: i32) -> (i32, i32) {
    %c0_i32 = arith.constant 0 : i32
    %c0_i32_0 = arith.constant 0 : i32
    %c0_i32_1 = arith.constant 0 : i32
    return %c0_i32, %c0_i32_0 : i32, i32
  }
  func.func @transform_11(%arg0: i32) -> (i32, i32) {
    %c0_i32 = arith.constant 0 : i32
    %c0_i32_0 = arith.constant 0 : i32
    return %arg0, %c0_i32 : i32, i32
  }
}

</mosaic_0001>

<bundles_post_ra>
// kernel: tpu_custom_call.1
= control target key start
LH: loop header
LB: loop body
LE: loop exit
PB: predicated region body
PF: predicated region fallthrough
CT: control target
= control target key end

     0   :  { %16 = vsyncpa [#allocation3], 0  ;;  %s1513_s0 = inlined_call_operand.vmem [shape: bf16[2,1024], index: 0, kind: input, shape index: {}]   ;;  %s1514_s1 = inlined_call_operand.hbm [shape: bf16[1024,128], index: 1, kind: input, shape index: {}]   ;;  %s1515_s2 = inlined_call_operand.vmem [shape: bf16[128,64], index: 2, kind: input, shape index: {}]   ;;  %s1516_s3 = inlined_call_operand.vmem [shape: bf16[64,32], index: 3, kind: input, shape index: {}]   ;;  %s1517_s4 = inlined_call_operand.vmem [shape: bf16[32,16], index: 4, kind: input, shape index: {}]   ;;  %s1518_s5 = inlined_call_operand.vmem [shape: bf16[16,128], index: 5, kind: input, shape index: {}]   ;;  %s1519_s6 = inlined_call_operand.vmem [shape: f32[1,128], index: 6, kind: input, shape index: {}]   ;;  %s1520_s7 = inlined_call_operand.vmem [shape: f32[1,64], index: 7, kind: input, shape index: {}]   ;;  %s1521_s8 = inlined_call_operand.vmem [shape: f32[1,32], index: 8, kind: input, shape index: {}]   ;;  %s1522_s9 = inlined_call_operand.vmem [shape: f32[1,16], index: 9, kind: input, shape index: {}]   ;;  %s1523_s10 = inlined_call_operand.vmem [shape: f32[1,128], index: 10, kind: input, shape index: {}]   ;;  %s1524_s11 = inlined_call_operand.hbm [shape: f32[2,128], index: 11, kind: output, shape index: {}]  }
   0x1   :  { %17 = vsyncpa [#allocation4], 0  ;;  %s24_s19 = sshll.u32 %s1514_s1, 4  ;;  %s1380_s20 = smov [#allocation2]   ;;  %s25_s19 = int_to_ptr.hbm [resolvable:$true] %s24_s19 }
   0x2   :  { %s26_s21 = sshll.u32 %s1380_s20, 4  ;;  %s1381_s22 = smov 64   ;;  %s27_s21 = int_to_ptr.vmem [resolvable:$true] %s26_s21 }
   0x3   :  { %s1382_s23 = smov 4  }
   0x4   :  { %32 = dma.hbm_to_vmem [thread:$0]  %s25_s19, 8192, %s27_s21, [#allocation3], %s1381_s22, %s1381_s22, %s1382_s23  }
   0x5   :  { %1376 = dma.done.wait [#allocation3], 8192  }
   0x6   :  { %1377 = vsyncadd [#allocation3], 4294959104  ;;  %v1247_v0 = vld [vmem:[#allocation2 + $0x38] sm:$0xff]  ;;  %v1246_v4 = vld [vmem:[#allocation2 + $0x30] sm:$0xff]  ;;  %vm816_vm0 = vcmask 523264   ;;  %vm855_vm1 = vcmask 261120  }
   0x7   :  { %v1255_v1 = vld [vmem:[#allocation2 + $0x78] sm:$0xff]  ;;  %591 = vmatpush.bf16.msra.mxu0 %v1247_v0  ;;  %v1254_v5 = vld [vmem:[#allocation2 + $0x70] sm:$0xff]  ;;  %v1245_v8 = vld [vmem:[#allocation2 + $0x28] sm:$0xff]  ;;  %vm886_vm2 = vcmask 130048   ;;  %s1383_s17 = smov [#allocation5]   ;;  %s911_s21 = sshll.u32 %s1524_s11, 4  ;;  %s912_s21 = int_to_ptr.hbm [resolvable:$true] %s911_s21 }
   0x8   :  { %v1263_v2 = vld [vmem:[#allocation2 + $0xb8] sm:$0xff]  ;;  %604 = vmatpush.bf16.msra.mxu1 %v1255_v1  ;;  %v1262_v6 = vld [vmem:[#allocation2 + $0xb0] sm:$0xff]  ;;  %v1253_v9 = vld [vmem:[#allocation2 + $0x68] sm:$0xff]  ;;  %s909_s18 = sshll.u32 %s1383_s17, 4  ;;  %s910_s18 = int_to_ptr.vmem [resolvable:$true] %s909_s18 }
   0x9   :  { %v1271_v3 = vld [vmem:[#allocation2 + $0xf8] sm:$0xff]  ;;  %617 = vmatpush.bf16.msra.mxu2 %v1263_v2  ;;  %v1270_v7 = vld [vmem:[#allocation2 + $0xf0] sm:$0xff]  ;;  %v1261_v10 = vld [vmem:[#allocation2 + $0xa8] sm:$0xff] }
   0xa   :  { %630 = vmatpush.bf16.msra.mxu3 %v1271_v3  ;;  %v1269_v11 = vld [vmem:[#allocation2 + $0xe8] sm:$0xff]  ;;  %v1244_v12 = vld [vmem:[#allocation2 + $0x20] sm:$0xff]  ;;  %v56_v16 = vld [vmem:[%s1513_s0] sm:$0xff] }
   0xb   :  { %592 = vmatpush.bf16.msra.mxu0 %v1246_v4  ;;  %v1252_v13 = vld [vmem:[#allocation2 + $0x60] sm:$0xff]  ;;  %v1243_v17 = vld [vmem:[#allocation2 + $0x18] sm:$0xff]  ;;  %190 = vst [vmem:[#allocation1] ss:$9 sm:$0xff] %v56_v16  ;;  %v1242_v21 = vld [vmem:[#allocation2 + $0x10] sm:$0xff] }
   0xc   :  { %605 = vmatpush.bf16.msra.mxu1 %v1254_v5  ;;  %v1260_v14 = vld [vmem:[#allocation2 + $0xa0] sm:$0xff]  ;;  %v1251_v18 = vld [vmem:[#allocation2 + $0x58] sm:$0xff]  ;;  %v1250_v22 = vld [vmem:[#allocation2 + $0x50] sm:$0xff] }
   0xd   :  { %618 = vmatpush.bf16.msra.mxu2 %v1262_v6  ;;  %v1268_v15 = vld [vmem:[#allocation2 + $0xe0] sm:$0xff]  ;;  %v1259_v19 = vld [vmem:[#allocation2 + $0x98] sm:$0xff]  ;;  %v1258_v23 = vld [vmem:[#allocation2 + $0x90] sm:$0xff] }
   0xe   :  { %631 = vmatpush.bf16.msra.mxu3 %v1270_v7  ;;  %v1267_v20 = vld [vmem:[#allocation2 + $0xd8] sm:$0xff]  ;;  %v1266_v24 = vld [vmem:[#allocation2 + $0xd0] sm:$0xff]  ;;  %v1241_v25 = vld [vmem:[#allocation2 + $0x8] sm:$0xff] }
   0xf   :  { %593 = vmatpush.bf16.msra.mxu0 %v1245_v8  ;;  %v1249_v26 = vld [vmem:[#allocation2 + $0x48] sm:$0xff]  ;;  %v1240_v29 = vld [vmem:[#allocation2] sm:$0xff]  ;;  %v1279_v33 = vld [vmem:[#allocation2 + $0x138] sm:$0xff] }
  0x10   :  { %606 = vmatpush.bf16.msra.mxu1 %v1253_v9  ;;  %v1257_v27 = vld [vmem:[#allocation2 + $0x88] sm:$0xff]  ;;  %v1248_v30 = vld [vmem:[#allocation2 + $0x40] sm:$0xff]  ;;  %v1287_v34 = vld [vmem:[#allocation2 + $0x178] sm:$0xff] }
  0x11   :  { %619 = vmatpush.bf16.msra.mxu2 %v1261_v10  ;;  %v1265_v28 = vld [vmem:[#allocation2 + $0xc8] sm:$0xff]  ;;  %v1256_v31 = vld [vmem:[#allocation2 + $0x80] sm:$0xff]  ;;  %v1295_v35 = vld [vmem:[#allocation2 + $0x1b8] sm:$0xff] }
  0x12   :  { %632 = vmatpush.bf16.msra.mxu3 %v1269_v11  ;;  %v1264_v32 = vld [vmem:[#allocation2 + $0xc0] sm:$0xff]  ;;  %v1303_v36 = vld [vmem:[#allocation2 + $0x1f8] sm:$0xff]  ;;  %v1278_v37 = vld [vmem:[#allocation2 + $0x130] sm:$0xff] }
  0x13   :  { %594 = vmatpush.bf16.msra.mxu0 %v1244_v12  ;;  %v193_v38 = vld [vmem:[#allocation1 + $0x12] sm:$0xff]  ;;  %v191_v39 = vld [vmem:[#allocation1] sm:$0xff]  ;;  %v192_v42 = vld [vmem:[#allocation1 + $0x9] sm:$0xff] }
  0x14   :  { %607 = vmatpush.bf16.msra.mxu1 %v1252_v13  ;;  %v1286_v40 = vld [vmem:[#allocation2 + $0x170] sm:$0xff]  ;;  %v1277_v45 = vld [vmem:[#allocation2 + $0x128] sm:$0xff]  ;;  %v1276_v49 = vld [vmem:[#allocation2 + $0x120] sm:$0xff] }
  0x15   :  { %620 = vmatpush.bf16.msra.mxu2 %v1260_v14  ;;  %v194_v41 = vld [vmem:[#allocation1 + $0x1b] sm:$0xff]  ;;  %v1285_v46 = vld [vmem:[#allocation2 + $0x168] sm:$0xff]  ;;  %v1284_v50 = vld [vmem:[#allocation2 + $0x160] sm:$0xff] }
  0x16   :  { %633 = vmatpush.bf16.msra.mxu3 %v1268_v15  ;;  %v1294_v43 = vld [vmem:[#allocation2 + $0x1b0] sm:$0xff]  ;;  %v1293_v47 = vld [vmem:[#allocation2 + $0x1a8] sm:$0xff]  ;;  %v1292_v51 = vld [vmem:[#allocation2 + $0x1a0] sm:$0xff] }
  0x17   :  { %595 = vmatpush.bf16.msra.mxu0 %v1243_v17  ;;  %v1302_v44 = vld [vmem:[#allocation2 + $0x1f0] sm:$0xff]  ;;  %v1301_v48 = vld [vmem:[#allocation2 + $0x1e8] sm:$0xff]  ;;  %v1300_v52 = vld [vmem:[#allocation2 + $0x1e0] sm:$0xff] }
  0x18   :  { %608 = vmatpush.bf16.msra.mxu1 %v1251_v18  ;;  %v1275_v53 = vld [vmem:[#allocation2 + $0x118] sm:$0xff]  ;;  %v1274_v57 = vld [vmem:[#allocation2 + $0x110] sm:$0xff]  ;;  %v1273_v61 = vld [vmem:[#allocation2 + $0x108] sm:$0xff] }
  0x19   :  { %621 = vmatpush.bf16.msra.mxu2 %v1259_v19  ;;  %v1283_v54 = vld [vmem:[#allocation2 + $0x158] sm:$0xff]  ;;  %v1282_v58 = vld [vmem:[#allocation2 + $0x150] sm:$0xff]  ;;  %v1281_v62 = vld [vmem:[#allocation2 + $0x148] sm:$0xff] }
  0x1a   :  { %634 = vmatpush.bf16.msra.mxu3 %v1267_v20  ;;  %v1291_v55 = vld [vmem:[#allocation2 + $0x198] sm:$0xff]  ;;  %v1290_v59 = vld [vmem:[#allocation2 + $0x190] sm:$0xff]  ;;  %v1289_v63 = vld [vmem:[#allocation2 + $0x188] sm:$0xff] }
  0x1b   :  { %596 = vmatpush.bf16.msra.mxu0 %v1242_v21  ;;  %v1299_v56 = vld [vmem:[#allocation2 + $0x1d8] sm:$0xff]  ;;  %v1298_v60 = vld [vmem:[#allocation2 + $0x1d0] sm:$0xff]  ;;  %v1297_v0 = vld [vmem:[#allocation2 + $0x1c8] sm:$0xff] }
  0x1c   :  { %609 = vmatpush.bf16.msra.mxu1 %v1250_v22  ;;  %v1272_v1 = vld [vmem:[#allocation2 + $0x100] sm:$0xff]  ;;  %v197_v7 = vld [vmem:[#allocation1 + $0x36] sm:$0xff]  ;;  %v198_v8 = vld [vmem:[#allocation1 + $0x3f] sm:$0xff] }
  0x1d   :  { %622 = vmatpush.bf16.msra.mxu2 %v1258_v23  ;;  %v1280_v2 = vld [vmem:[#allocation2 + $0x140] sm:$0xff]  ;;  %v1311_v9 = vld [vmem:[%s1515_s2 + $0x38] sm:$0xff]  ;;  %v1310_v10 = vld [vmem:[%s1515_s2 + $0x30] sm:$0xff] }
  0x1e   :  { %635 = vmatpush.bf16.msra.mxu3 %v1266_v24  ;;  %v1288_v3 = vld [vmem:[#allocation2 + $0x180] sm:$0xff]  ;;  %v1308_v12 = vld [vmem:[%s1515_s2 + $0x20] sm:$0xff]  ;;  %v1307_v13 = vld [vmem:[%s1515_s2 + $0x18] sm:$0xff] }
  0x1f   :  { %597 = vmatpush.bf16.msra.mxu0 %v1241_v25  ;;  %v1296_v4 = vld [vmem:[#allocation2 + $0x1c0] sm:$0xff]  ;;  %v1306_v15 = vld [vmem:[%s1515_s2 + $0x10] sm:$0xff]  ;;  %v1304_v21 = vld [vmem:[%s1515_s2] sm:$0xff] }
  0x20   :  { %610 = vmatpush.bf16.msra.mxu1 %v1249_v26  ;;  %v195_v5 = vld [vmem:[#allocation1 + $0x24] sm:$0xff]  ;;  %v196_v6 = vld [vmem:[#allocation1 + $0x2d] sm:$0xff]  ;;  %v1323_v23 = vld [vmem:[%s1519_s6] ss:$0 sm:$0xff] }
  0x21   :  { %623 = vmatpush.bf16.msra.mxu2 %v1257_v27  ;;  %v1309_v11 = vld [vmem:[%s1515_s2 + $0x28] sm:$0xff]  ;;  %v1315_v24 = vld [vmem:[%s1516_s3 + $0x18] sm:$0xff]  ;;  %v1314_v27 = vld [vmem:[%s1516_s3 + $0x10] sm:$0xff] }
  0x22   :  { %636 = vmatpush.bf16.msra.mxu3 %v1265_v28  ;;  %v1305_v17 = vld [vmem:[%s1515_s2 + $0x8] sm:$0xff] }
  0x23   :  { %598 = vmatpush.bf16.msra.mxu0 %v1240_v29  ;;  %v1313_v29 = vld [vmem:[%s1516_s3 + $0x8] sm:$0xff] }
  0x24   :  { %611 = vmatpush.bf16.msra.mxu1 %v1248_v30 }
  0x25   :  { %624 = vmatpush.bf16.msra.mxu2 %v1256_v31 }
  0x26   :  { %637 = vmatpush.bf16.msra.mxu3 %v1264_v32  ;;  %599 = vmatmul.bf16.vlgmr.msra.gmra.mxu0 %v191_v39 }
  0x27   :  { %643 = vmatpush.bf16.msrb.mxu0 %v1279_v33  ;;  %612 = vmatmul.bf16.vlgmr.msra.gmra.mxu1 %v192_v42 }
  0x28   :  { %656 = vmatpush.bf16.msrb.mxu1 %v1287_v34  ;;  %625 = vmatmul.bf16.vlgmr.msra.gmra.mxu2 %v193_v38 }
  0x29   :  { %669 = vmatpush.bf16.msrb.mxu2 %v1295_v35  ;;  %638 = vmatmul.bf16.vlgmr.msra.gmra.mxu3 %v194_v41 }
  0x2a   :  { %682 = vmatpush.bf16.msrb.mxu3 %v1303_v36 }
  0x2b   :  { %644 = vmatpush.bf16.msrb.mxu0 %v1278_v37 }
  0x2c   :  { %657 = vmatpush.bf16.msrb.mxu1 %v1286_v40 }
  0x2d   :  { %670 = vmatpush.bf16.msrb.mxu2 %v1294_v43 }
  0x2e   :  { %683 = vmatpush.bf16.msrb.mxu3 %v1302_v44 }
  0x2f   :  { %645 = vmatpush.bf16.msrb.mxu0 %v1277_v45 }
  0x30   :  { %658 = vmatpush.bf16.msrb.mxu1 %v1285_v46 }
  0x31   :  { %671 = vmatpush.bf16.msrb.mxu2 %v1293_v47  ;;  %v1312_v47 = vld [vmem:[%s1516_s3] sm:$0xff] }
  0x32   :  { %684 = vmatpush.bf16.msrb.mxu3 %v1301_v48  ;;  %v1317_v48 = vld [vmem:[%s1517_s4 + $0x8] sm:$0xff] }
  0x33   :  { %646 = vmatpush.bf16.msrb.mxu0 %v1276_v49  ;;  %v1316_v49 = vld [vmem:[%s1517_s4] sm:$0xff] }
  0x34   :  { %659 = vmatpush.bf16.msrb.mxu1 %v1284_v50  ;;  %v1324_v50 = vld [vmem:[%s1520_s7] ss:$0 sm:$0xff] }
  0x35   :  { %672 = vmatpush.bf16.msrb.mxu2 %v1292_v51 }
  0x36   :  { %685 = vmatpush.bf16.msrb.mxu3 %v1300_v52 }
  0x37   :  { %647 = vmatpush.bf16.msrb.mxu0 %v1275_v53 }
  0x38   :  { %660 = vmatpush.bf16.msrb.mxu1 %v1283_v54 }
  0x39   :  { %673 = vmatpush.bf16.msrb.mxu2 %v1291_v55 }
  0x3a   :  { %686 = vmatpush.bf16.msrb.mxu3 %v1299_v56  ;;  %v1318_v56 = vld [vmem:[%s1518_s5] sm:$0xff] }
  0x3b   :  { %648 = vmatpush.bf16.msrb.mxu0 %v1274_v57  ;;  %v1325_v57 = vld [vmem:[%s1521_s8] ss:$0 sm:$0xff] }
  0x3c   :  { %661 = vmatpush.bf16.msrb.mxu1 %v1282_v58 }
  0x3d   :  { %674 = vmatpush.bf16.msrb.mxu2 %v1290_v59 }
  0x3e   :  { %687 = vmatpush.bf16.msrb.mxu3 %v1298_v60 }
  0x3f   :  { %649 = vmatpush.bf16.msrb.mxu0 %v1273_v61 }
  0x40   :  { %662 = vmatpush.bf16.msrb.mxu1 %v1281_v62 }
  0x41   :  { %675 = vmatpush.bf16.msrb.mxu2 %v1289_v63  ;;  %v1326_v63 = vld [vmem:[%s1522_s9] ss:$0 sm:$0xff] }
  0x42   :  { %688 = vmatpush.bf16.msrb.mxu3 %v1297_v0 }
  0x43   :  { %650 = vmatpush.bf16.msrb.mxu0 %v1272_v1 }
  0x44   :  { %663 = vmatpush.bf16.msrb.mxu1 %v1280_v2 }
  0x45   :  { %676 = vmatpush.bf16.msrb.mxu2 %v1288_v3 }
  0x46   :  { %689 = vmatpush.bf16.msrb.mxu3 %v1296_v4  ;;  %651 = vmatmul.bf16.vlgmr.msrb.gmra.mxu0 %v195_v5  ;;  %v1327_v5 = vld [vmem:[%s1523_s10] ss:$0 sm:$0xff] }
  0x47   :  { %664 = vmatmul.bf16.vlgmr.msrb.gmra.mxu1 %v196_v6  ;;  %765 = vmatpush.bf16.msra.mxu0 %v1311_v9 }
  0x48   :  { %677 = vmatmul.bf16.vlgmr.msrb.gmra.mxu2 %v197_v7  ;;  %824 = vmatpush.bf16.msra.mxu1 %v1315_v24 }
  0x49   :  { %690 = vmatmul.bf16.vlgmr.msrb.gmra.mxu3 %v198_v8  ;;  %865 = vmatpush.bf16.msra.mxu2 %v1317_v48 }
  0x4a   :  { %897 = vmatpush.bf16.msra.mxu3 %v1318_v56 }
  0x4b   :  { %766 = vmatpush.bf16.msra.mxu0 %v1310_v10 }
  0x4c   :  { %825 = vmatpush.bf16.msra.mxu1 %v1314_v27 }
  0x4d   :  { %866 = vmatpush.bf16.msra.mxu2 %v1316_v49 }
  0x4f   :  { %767 = vmatpush.bf16.msra.mxu0 %v1309_v11 }
  0x50   :  { %826 = vmatpush.bf16.msra.mxu1 %v1313_v29 }
  0x53   :  { %768 = vmatpush.bf16.msra.mxu0 %v1308_v12 }
  0x54   :  { %827 = vmatpush.bf16.msra.mxu1 %v1312_v47 }
  0x57   :  { %769 = vmatpush.bf16.msra.mxu0 %v1307_v13 }
  0x5b   :  { %770 = vmatpush.bf16.msra.mxu0 %v1306_v15 }
  0x5f   :  { %771 = vmatpush.bf16.msra.mxu0 %v1305_v17 }
  0x63   :  { %772 = vmatpush.bf16.msra.mxu0 %v1304_v21 }
  0xa3   :  { %v600_v14 = vpop.f32.mrf.mxu0 }
  0xa4   :  { %v613_v16 = vpop.f32.mrf.mxu1  ;;  %v601_v28 = vadd.f32 %v1323_v23, %v600_v14 }
  0xa6   :  { %v614_v30 = vadd.f32 %v613_v16, %v601_v28 }
  0xab   :  { %v626_v18 = vpop.f32.mrf.mxu2  ;;  %v602_v20 = vpop.f32.mrf.mxu0 }
  0xac   :  { %v639_v19 = vpop.f32.mrf.mxu3  ;;  %v615_v22 = vpop.f32.mrf.mxu1  ;;  %v627_v31 = vadd.f32 %v626_v18, %v614_v30 }
  0xae   :  { %v640_v32 = vadd.f32 %v639_v19, %v627_v31 }
  0xb3   :  { %v628_v25 = vpop.f32.mrf.mxu2 }
  0xb4   :  { %v641_v26 = vpop.f32.mrf.mxu3 }
  0xc3   :  { %v652_v33 = vpop.f32.mrf.mxu0 }
  0xc4   :  { %v665_v34 = vpop.f32.mrf.mxu1  ;;  %v653_v35 = vadd.f32 %v652_v33, %v640_v32 }
  0xc6   :  { %v666_v36 = vadd.f32 %v665_v34, %v653_v35 }
  0xcb   :  { %v678_v37 = vpop.f32.mrf.mxu2  ;;  %v654_v40 = vpop.f32.mrf.mxu0 }
  0xcc   :  { %v691_v38 = vpop.f32.mrf.mxu3  ;;  %v679_v39 = vadd.f32 %v678_v37, %v666_v36  ;;  %v667_v41 = vpop.f32.mrf.mxu1 }
  0xce   :  { %v692_v42 = vadd.f32 %v691_v38, %v679_v39 }
  0xd0   :  { %v695_v43 = vmax.f32 %v692_v42, 0.0 }
  0xd2   :  { %v696_v44 = vpack.c.bf16 %v695_v43, %v695_v43 }
  0xd3   :  { %v680_v45 = vpop.f32.mrf.mxu2 }
  0xd4   :  { %v693_v46 = vpop.f32.mrf.mxu3  ;;  %773 = vmatmul.bf16.vlgmr.msra.gmra.mxu0 %v696_v44 }
 0x151   :  { %v774_v51 = vpop.f32.mrf.mxu0 }
 0x152   :  { %v775_v52 = vadd.f32 %v1324_v50, %v774_v51 }
 0x154   :  { %v778_v53 = vmax.f32 %v775_v52, 0.0 }
 0x156   :  { %v779_v54 = vpack.c.bf16 %v778_v53, %v778_v53 }
 0x158   :  { %1225 = vmatmul.msk.bf16.vlgmr.msra.gmra.mxu1 %vm816_vm0, %v779_v54 }
 0x159   :  { %v776_v55 = vpop.f32.mrf.mxu0 }
 0x1d5   :  { %v829_v58 = vpop.f32.mrf.mxu1 }
 0x1d6   :  { %v830_v59 = vadd.f32 %v1325_v57, %v829_v58 }
 0x1d8   :  { %v833_v60 = vmax.f32 %v830_v59, 0.0 }
 0x1da   :  { %v834_v61 = vpack.c.bf16 %v833_v60, %v833_v60 }
 0x1dc   :  { %1234 = vmatmul.msk.bf16.vlgmr.msra.gmra.mxu2 %vm855_vm1, %v834_v61 }
 0x1dd   :  { %v831_v62 = vpop.f32.mrf.mxu1 }
 0x25f   :  { %v868_v0 = vpop.f32.mrf.mxu2 }
 0x260   :  { %v869_v1 = vadd.f32 %v1326_v63, %v868_v0 }
 0x262   :  { %v872_v2 = vmax.f32 %v869_v1, 0.0 }
 0x264   :  { %v873_v3 = vpack.c.bf16 %v872_v2, %v872_v2 }
 0x266   :  { %1239 = vmatmul.msk.bf16.vlgmr.msra.gmra.mxu3 %vm886_vm2, %v873_v3 }
 0x267   :  { %v870_v4 = vpop.f32.mrf.mxu2 }
 0x2e9   :  { %v899_v6 = vpop.f32.mrf.mxu3 }
 0x2ea   :  { %v900_v7 = vadd.f32 %v1327_v5, %v899_v6 }
 0x2ec   :  { %903 = vst [vmem:[#allocation5] sm:$0x3] %v900_v7 }
 0x2ed   :  { %914 = dma.vmem_to_hbm [thread:$0]  %s910_s18, 32, %s912_s21, [#allocation4]  }
 0x2f1   :  { %v901_v8 = vpop.f32.mrf.mxu3 }
 0x2f2   :  { %1378 = dma.done.wait [#allocation4], 32  }
 0x2f3   :  { %1379 = vsyncadd [#allocation4], 4294967264 }
 0x2f4   :  { %919 = vsyncpa [#allocation3], 1 }
 0x2f5   :  { %920 = vsyncpa [#allocation4], 1 }

</bundles_post_ra>
